<compile_context>
chip_gen: v7x
topology: tpu7x:2x2x1
jax: 0.10.0
libtpu: 0.0.40
codegen_flags: <defaults>
</compile_context>

<pallas_src>
import functools

import jax
import jax.numpy as jnp
import numpy as np
from jax.experimental import pallas as pl
from jax.experimental.pallas import tpu as pltpu


def _round_up(v, m):
    return ((v + m - 1) // m) * m


def _largest_divisor_leq(n, cap):
    cap = max(1, min(cap, n))
    for d in range(cap, 0, -1):
        if n % d == 0:
            return d
    return 1


def _fromrgb_kernel(x_ref, w_ref, b_ref, o_ref, *, negative_slope):
    # x_ref: (Bb, Cin, ts)  w_ref: (Cout, Cin)  b_ref: (Cout, 1)  o_ref: (Bb, Cout, ts)
    bb, cin, _ = x_ref.shape
    w = w_ref[...]                     # (Cout, Cin), f32
    bias = b_ref[...]                  # (Cout, 1), f32
    for b in range(bb):                # small, statically unrolled
        xb = x_ref[b].astype(jnp.float32)              # (Cin, ts)
        if cin <= 8:
            # Unrolled VPU outer-product: ~2*Cin VALU ops per output vreg,
            # pure slack in an HBM-write-bound kernel; avoids MXU/MRF path.
            acc = w[:, 0:1] * xb[0:1, :]               # (Cout, ts)
            for c in range(1, cin):
                acc = acc + w[:, c:c + 1] * xb[c:c + 1, :]
        else:
            acc = jnp.dot(w, xb, preferred_element_type=jnp.float32)
        acc = acc + bias                               # lane broadcast
        acc = jnp.where(acc >= 0, acc, negative_slope * acc)   # LeakyReLU(0.2)
        o_ref[b] = acc.astype(o_ref.dtype)


def from_rgb(x_nchw, weight, bias, *, gain=np.sqrt(2.0), use_wscale=True,
             negative_slope=0.2, tile_sp=None,
             vmem_budget_bytes=12 * 1024 * 1024):
    """x_nchw: (B, Cin, H, W); weight: (Cout, Cin, 1, 1); bias: (Cout,)."""
    B, Cin, H, W = x_nchw.shape
    Cout = weight.shape[0]
    S = H * W

    # Equalized learning-rate scaling (runtime weight scale).
    fan_in = Cin * 1 * 1
    scale = float(gain) / float(np.sqrt(fan_in)) if use_wscale else 1.0

    # Parameter glue: 1x1 conv weight -> (Cout, Cin) matmul weight (f32).
    w_mat = weight.reshape(Cout, Cin).astype(jnp.float32) * scale
    b_col = bias.reshape(Cout, 1).astype(jnp.float32)

    # Native NCHW view: (B, Cin, S). Pure reshape, no transpose.
    x_s = x_nchw.reshape(B, Cin, S)

    # ---- Tile selection ------------------------------------------------------
    # VMEM footprint per grid step (bytes), sublane-padded:
    #   2 * Bb * (cin_pad + cout_pad) * ts * 4   double-buffered in/out blocks
    # + cout_pad * ts * 4                        f32 acc temp (one batch elem)
    # + small constants (w, b blocks)
    cin_pad = _round_up(Cin, 8)
    cout_pad = _round_up(Cout, 8)
    const_bytes = 4 * cout_pad * 128 * 4       # w + b blocks, double-buffered

    def footprint(ts_, bb_):
        return (2 * bb_ * (cin_pad + cout_pad) * ts_ * 4
                + cout_pad * ts_ * 4 + const_bytes)

    s_rounded = _round_up(S, 128)

    # Largest spatial tile the budget allows at Bb = 1.
    ts_cap = vmem_budget_bytes // (4 * (2 * (cin_pad + cout_pad) + cout_pad))
    ts_cap = max(128, (ts_cap // 128) * 128)
    cap = min(ts_cap, s_rounded)
    if tile_sp is not None:
        # Sanitize user tile: round down to a multiple of 128, floor at 128.
        cap = min(cap, max(128, (int(tile_sp) // 128) * 128))

    # Divisor-based tile: largest multiple of 128 that divides s_rounded and
    # is <= cap, so the pad/slice only cover <= 127 lanes.  Fall back to a big
    # non-divisor tile (accepting extra padding) if the best divisor would
    # shrink the tile by more than 4x.
    m = s_rounded // 128
    cap_blocks = max(1, cap // 128)
    d = _largest_divisor_leq(m, cap_blocks)
    target = min(cap_blocks, m)
    if d * 4 < target:
        d = target
    ts = d * 128
    s_pad = _round_up(s_rounded, ts)
    num_tiles = s_pad // ts

    # Batch blocking: pack as many batch elements per step as the budget
    # allows (main lever at low resolutions where ts == S already).
    bb = 1
    for cand in range(B, 0, -1):
        if B % cand == 0 and footprint(ts, cand) <= vmem_budget_bytes:
            bb = cand
            break

    # v7x has 2 TensorCores: keep >= 2 total grid steps when possible.
    if (B // bb) * num_tiles < 2:
        if bb > 1:
            bb = _largest_divisor_leq(B, bb - 1)
        elif num_tiles == 1 and ts % 256 == 0:
            ts //= 2
            num_tiles = s_pad // ts

    if s_pad != S:
        x_s = jnp.pad(x_s, ((0, 0), (0, 0), (0, s_pad - S)))

    kernel = functools.partial(_fromrgb_kernel, negative_slope=negative_slope)
    vmem_limit = int(min(max(footprint(ts, bb) * 5 // 4 + (1 << 20), 16 << 20),
                         48 << 20))

    out_s = pl.pallas_call(
        kernel,
        out_shape=jax.ShapeDtypeStruct((B, Cout, s_pad), x_nchw.dtype),
        grid_spec=pltpu.PrefetchScalarGridSpec(
            num_scalar_prefetch=0,
            grid=(B // bb, num_tiles),
            in_specs=[
                # (Bb, Cin, ts): spatial (x128) on lanes -> lane-dense loads.
                pl.BlockSpec((bb, Cin, ts), lambda bi, j: (bi, 0, j)),
                pl.BlockSpec((Cout, Cin), lambda bi, j: (0, 0)),
                pl.BlockSpec((Cout, 1), lambda bi, j: (0, 0)),
            ],
            # (Bb, Cout, ts): lane-dense (unmasked) stores.
            out_specs=pl.BlockSpec((bb, Cout, ts), lambda bi, j: (bi, 0, j)),
        ),
        compiler_params=pltpu.CompilerParams(
            dimension_semantics=("parallel", "parallel"),
            vmem_limit_bytes=vmem_limit),
    )(x_s, w_mat, b_col)

    if s_pad != S:
        out_s = out_s[:, :, :S]
    return out_s.reshape(B, Cout, H, W)


if __name__ == "__main__":
    key = jax.random.PRNGKey(0)
    kx, kw, kx2, kw2 = jax.random.split(key, 4)

    def reference(x, weight, bias, gain=np.sqrt(2.0), slope=0.2):
        Cout, Cin = weight.shape[0], weight.shape[1]
        scale = gain / np.sqrt(Cin)
        y = jnp.einsum("bchw,oc->bohw", x.astype(jnp.float32),
                       weight.reshape(Cout, Cin).astype(jnp.float32) * scale)
        y = y + bias.reshape(1, Cout, 1, 1)
        return jnp.where(y >= 0, y, slope * y).astype(x.dtype)

    # Case 1: canonical FromRGB shapes (RGB -> 32 channels, 16x16 input).
    B, Cin, H, W, Cout = 2, 3, 16, 16, 32
    x = jax.random.normal(kx, (B, Cin, H, W), dtype=jnp.float32)
    weight = jax.random.normal(kw, (Cout, Cin, 1, 1), dtype=jnp.float32)   # N(0,1)
    bias = jnp.zeros((Cout,), dtype=jnp.float32)
    out = jax.block_until_ready(from_rgb(x, weight, bias))
    np.testing.assert_allclose(np.asarray(out),
                               np.asarray(reference(x, weight, bias)),
                               rtol=1e-5, atol=1e-5)

    # Case 2: non-128-aligned spatial (12x12) + batch-blocking path (Bb > 1).
    B, Cin, H, W, Cout = 4, 3, 12, 12, 16
    x = jax.random.normal(kx2, (B, Cin, H, W), dtype=jnp.float32)
    weight = jax.random.normal(kw2, (Cout, Cin, 1, 1), dtype=jnp.float32)
    bias = jnp.zeros((Cout,), dtype=jnp.float32)
    out = jax.block_until_ready(from_rgb(x, weight, bias))
    np.testing.assert_allclose(np.asarray(out),
                               np.asarray(reference(x, weight, bias)),
                               rtol=1e-5, atol=1e-5)

    # TODO(synk): generic `activation` / conv_dim != 2 variants of the PyTorch
    # module are not modeled; LeakyReLU(0.2) + 2D 1x1 conv is implemented.
    print("KERNEL_OK")
</pallas_src>

<mosaic_0001>
module attributes {stable_mosaic.version = 11 : i64} {
  func.func @_fromrgb_kernel(%arg0: i32, %arg1: i32, %arg2: memref<1x3x256xf32, #tpu.memory_space<vmem>>, %arg3: memref<32x3xf32, #tpu.memory_space<vmem>>, %arg4: memref<32x1xf32, #tpu.memory_space<vmem>>, %arg5: memref<1x32x256xf32, #tpu.memory_space<vmem>>) attributes {dimension_semantics = [#tpu.dimension_semantics<parallel>, #tpu.dimension_semantics<parallel>], iteration_bounds = array<i64: 2, 1>, scalar_prefetch = 0 : i64, scratch_operands = 0 : i64, tpu.core_type = #tpu.core_type<tc>, window_params = [{transform_indices = @transform_0, window_bounds = array<i64: 1, 3, 256>}, {pipeline_mode = #tpu.pipeline_mode<synchronous>, transform_indices = @transform_1, window_bounds = array<i64: 32, 3>}, {pipeline_mode = #tpu.pipeline_mode<synchronous>, transform_indices = @transform_2, window_bounds = array<i64: 32, 1>}, {transform_indices = @transform_3, window_bounds = array<i64: 1, 32, 256>}]} {
    %c0 = arith.constant 0 : index
    %c0_0 = arith.constant 0 : index
    %0 = vector.load %arg3[%c0, %c0_0] : memref<32x3xf32, #tpu.memory_space<vmem>>, vector<32x3xf32>
    %c0_1 = arith.constant 0 : index
    %c0_2 = arith.constant 0 : index
    %1 = vector.load %arg4[%c0_1, %c0_2] : memref<32x1xf32, #tpu.memory_space<vmem>>, vector<32x1xf32>
    %c0_3 = arith.constant 0 : index
    %c0_4 = arith.constant 0 : index
    %c0_5 = arith.constant 0 : index
    %2 = vector.load %arg2[%c0_3, %c0_4, %c0_5] : memref<1x3x256xf32, #tpu.memory_space<vmem>>, vector<1x3x256xf32>
    %3 = vector.shape_cast %2 : vector<1x3x256xf32> to vector<3x256xf32>
    %4 = vector.extract_strided_slice %0 {offsets = [0, 0], sizes = [32, 1], strides = [1, 1]} : vector<32x3xf32> to vector<32x1xf32>
    %5 = vector.extract_strided_slice %3 {offsets = [0, 0], sizes = [1, 256], strides = [1, 1]} : vector<3x256xf32> to vector<1x256xf32>
    %6 = vector.broadcast %4 : vector<32x1xf32> to vector<32x256xf32>
    %7 = vector.broadcast %5 : vector<1x256xf32> to vector<32x256xf32>
    %8 = arith.mulf %6, %7 : vector<32x256xf32>
    %9 = vector.extract_strided_slice %0 {offsets = [0, 1], sizes = [32, 1], strides = [1, 1]} : vector<32x3xf32> to vector<32x1xf32>
    %10 = vector.extract_strided_slice %3 {offsets = [1, 0], sizes = [1, 256], strides = [1, 1]} : vector<3x256xf32> to vector<1x256xf32>
    %11 = vector.broadcast %9 : vector<32x1xf32> to vector<32x256xf32>
    %12 = vector.broadcast %10 : vector<1x256xf32> to vector<32x256xf32>
    %13 = arith.mulf %11, %12 : vector<32x256xf32>
    %14 = arith.addf %8, %13 : vector<32x256xf32>
    %15 = vector.extract_strided_slice %0 {offsets = [0, 2], sizes = [32, 1], strides = [1, 1]} : vector<32x3xf32> to vector<32x1xf32>
    %16 = vector.extract_strided_slice %3 {offsets = [2, 0], sizes = [1, 256], strides = [1, 1]} : vector<3x256xf32> to vector<1x256xf32>
    %17 = vector.broadcast %15 : vector<32x1xf32> to vector<32x256xf32>
    %18 = vector.broadcast %16 : vector<1x256xf32> to vector<32x256xf32>
    %19 = arith.mulf %17, %18 : vector<32x256xf32>
    %20 = arith.addf %14, %19 : vector<32x256xf32>
    %21 = vector.broadcast %1 : vector<32x1xf32> to vector<32x256xf32>
    %22 = arith.addf %20, %21 : vector<32x256xf32>
    %cst = arith.constant 0.000000e+00 : f32
    %23 = vector.broadcast %cst : f32 to vector<32x256xf32>
    %24 = arith.cmpf oge, %22, %23 : vector<32x256xf32>
    %cst_6 = arith.constant 2.000000e-01 : f32
    %25 = vector.broadcast %cst_6 : f32 to vector<32x256xf32>
    %26 = arith.mulf %25, %22 : vector<32x256xf32>
    %27 = arith.select %24, %22, %26 : vector<32x256xi1>, vector<32x256xf32>
    %c0_7 = arith.constant 0 : index
    %c0_8 = arith.constant 0 : index
    %c0_9 = arith.constant 0 : index
    %28 = vector.load %arg5[%c0_7, %c0_8, %c0_9] : memref<1x32x256xf32, #tpu.memory_space<vmem>>, vector<1x32x256xf32>
    %29 = vector.shape_cast %28 : vector<1x32x256xf32> to vector<32x256xf32>
    %30 = vector.shape_cast %27 : vector<32x256xf32> to vector<1x32x256xf32>
    tpu.vector_store %arg5[%c0_7, %c0_8, %c0_9], %30 {strides = array<i32>} : memref<1x32x256xf32, #tpu.memory_space<vmem>>, vector<1x32x256xf32>,
    return
  }
  func.func @transform_0(%arg0: i32, %arg1: i32) -> (i32, i32, i32) {
    %c0_i32 = arith.constant 0 : i32
    %c0_i32_0 = arith.constant 0 : i32
    return %arg0, %c0_i32, %arg1 : i32, i32, i32
  }
  func.func @transform_1(%arg0: i32, %arg1: i32) -> (i32, i32) {
    %c0_i32 = arith.constant 0 : i32
    %c0_i32_0 = arith.constant 0 : i32
    %c0_i32_1 = arith.constant 0 : i32
    return %c0_i32, %c0_i32_0 : i32, i32
  }
  func.func @transform_2(%arg0: i32, %arg1: i32) -> (i32, i32) {
    %c0_i32 = arith.constant 0 : i32
    %c0_i32_0 = arith.constant 0 : i32
    %c0_i32_1 = arith.constant 0 : i32
    return %c0_i32, %c0_i32_0 : i32, i32
  }
  func.func @transform_3(%arg0: i32, %arg1: i32) -> (i32, i32, i32) {
    %c0_i32 = arith.constant 0 : i32
    %c0_i32_0 = arith.constant 0 : i32
    return %arg0, %c0_i32, %arg1 : i32, i32, i32
  }
}

</mosaic_0001>

<bundles_post_ra>
// kernel: tpu_custom_call.1
= control target key start
LH: loop header
LB: loop body
LE: loop exit
PB: predicated region body
PF: predicated region fallthrough
CT: control target
= control target key end

     0   :  { %8 = vsyncpa [#allocation3], 0  ;;  %s856_s0 = inlined_call_operand.vmem [shape: f32[2,3,256], index: 0, kind: input, shape index: {}]   ;;  %s857_s1 = inlined_call_operand.vmem [shape: f32[32,3], index: 1, kind: input, shape index: {}]   ;;  %s858_s2 = inlined_call_operand.vmem [shape: f32[32,1], index: 2, kind: input, shape index: {}]   ;;  %s859_s3 = inlined_call_operand.hbm [shape: f32[2,32,256], index: 3, kind: output, shape index: {}]  }
   0x1   :  { %10 = vsyncpa [#allocation3 + $0x1], 0  ;;  %s699_s12 = smov 0   ;;  %s701_s13 = smov 0  }
   0x2   :  { %s703_s14 = smov 0   ;;  %s705_s15 = smov 0  }
   0x3   :  { %s707_s16 = smov 0   ;;  %s709_s17 = smov 0  }
   0x4 LB: > { %s511_s18 = sadd.s32 4294967295, %s671_s17   ;;  %s512_s19 = sadd.s32 4294967294, %s671_s17   ;;  %s671_s17 = sphi %s709_s17, %s16_s17   ;;  %s667_s16 = sphi %s707_s16, %s866_s16   ;;  %s663_s15 = sphi %s705_s15, %s865_s15   ;;  %s659_s14 = sphi %s703_s14, %s864_s14   ;;  %s655_s13 = sphi %s701_s13, %s863_s13   ;;  %s651_s12 = sphi %s699_s12, %s862_s12  }
   0x5   : > { %s28_s20 = sadd.s32 1, %s667_s16  ;;  %s107_s21 = sadd.s32 1, %s659_s14 }
   0x6   : > { %p30_p0 = scmp.ge.s32.totalorder %s28_s20, 2  ;;  %p117_p1 = scmp.ne.s32.totalorder %s659_s14, %s655_s13 }
   0x7   : > { %p118_p2 = scmp.eq.s32.totalorder %s511_s18, 1  ;;  %p123_p3 = scmp.ne.s32.totalorder %s655_s13, %s651_s12 }
   0x8   : > { %s868_s20 = smov (%p30_p0, %s28_s20), 0  ;;  %p124_p5 = scmp.eq.s32.totalorder %s512_s19, 1 }
   0x9   : > { %p739_p4 = por %p118_p2, %p117_p1  ;;  %s102_s23 = ssub.s32 %s667_s16, %s868_s20 }
   0xa   : > { %p515_p6 = scmp.ge.s32.totalorder %s671_s17, 1  ;;  %p105_p7 = scmp.eq.s32.totalorder %s102_s23, 0 }
   0xb   : > { %p746_p8 = por %p124_p5, %p123_p3  ;;  %p161_p9 = scmp.lt.s32.totalorder %s671_s17, 3 }
   0xc   : > { %s752_s25 = scalar_select %p105_p7, %s659_s14, %s107_s21  }
   0xd   : > { %p162_p10 = pnand %p515_p6, %p161_p9 }
   0xe   : > { %v202_v0 = vld [vmem:[%s857_s1 + $0x10] sm:$0xff] (!%p162_p10)  ;;  %v200_v1 = vld [vmem:[%s857_s1] sm:$0xff] (!%p162_p10)  ;;  %v673_v2 = vmov (!%p162_p10), 1   ;;  %v674_v3 = vmov (!%p162_p10), 0   ;;  %v203_v4 = vld [vmem:[%s857_s1 + $0x18] sm:$0xff] (!%p162_p10)  ;;  %v675_v6 = vmov (!%p162_p10), 2   ;;  %v230_v11 = vlaneseq (!%p162_p10) }
   0xf   : > { %165 = sbr.rel (%p162_p10) target bundleno = 200 (0xc8), region = 32  ;;  %587 = vset.pattern.permute.xlu0 (!%p162_p10), %v673_v2  ;;  %586 = vset.pattern.permute.xlu1 (!%p162_p10), %v674_v3  ;;  %v201_v5 = vld [vmem:[%s857_s1 + $0x8] sm:$0xff] (!%p162_p10)  ;;  %v204_v7 = vld [vmem:[%s858_s2] sm:$0xff] (!%p162_p10)  ;;  %v207_v8 = vld [vmem:[%s858_s2 + $0x18] sm:$0xff] (!%p162_p10)  ;;  %p190_p11 = scmp.lt.s32.totalorder (!%p162_p10), %s663_s15, 1 }
  0x10   : > { %221 = vperm.xlu1 (!%p162_p10), %586, %v202_v0   ;;  %257 = vperm.xlu0 (!%p162_p10), %587, %v200_v1   ;;  %v205_v9 = vld [vmem:[%s858_s2 + $0x8] sm:$0xff] (!%p162_p10)  ;;  %v206_v10 = vld [vmem:[%s858_s2 + $0x10] sm:$0xff] (!%p162_p10)  ;;  %v231_v14 = vshrl.u32 (!%p162_p10), %v230_v11, 7  ;;  %s186_s30 = sand.u32 (!%p162_p10), 1, %s655_s13   ;;  %s525_s6 = sshll.u32 (!%p162_p10), %s663_s15, 10 }
  0x11   : > { %s786_s4 = sshll.u32 (!%p162_p10), %s186_s30, 6  ;;  %s810_s10 = scalar_lea.sflag (!%p162_p10), [#allocation3], %s186_s30 }
  0x12   : > { %v232_v16 = vsub.s32 (!%p162_p10), 0, %v231_v14  ;;  %v236_v17 = vsub.s32 (!%p162_p10), 4, %v231_v14  ;;  %v274_v20 = vsub.s32 (!%p162_p10), 1, %v231_v14  ;;  %v278_v21 = vsub.s32 (!%p162_p10), 5, %v231_v14  ;;  %s789_s5 = scalar_lea.vmem (!%p162_p10), [#allocation2], %s786_s4  ;;  %s676_s18 = smov (!%p162_p10), [#allocation2]  }
  0x13   : > { %v324_v22 = vsub.s32 (!%p162_p10), 2, %v231_v14  ;;  %v328_v23 = vsub.s32 (!%p162_p10), 6, %v231_v14  ;;  %s432_s7 = sshll.u32 (!%p162_p10), %s789_s5, 4  ;;  %s597_s19 = sshll.u32 (!%p162_p10), %s676_s18, 4  ;;  %s804_s7 = int_to_ptr.vmem [resolvable:$true] %s432_s7  ;;  %s598_s19 = int_to_ptr.vmem [resolvable:$false] %s597_s19 }
  0x14   : > { %226 = vperm.xlu1 (!%p162_p10), %586, %v203_v4   ;;  %269 = vperm.xlu0 (!%p162_p10), %587, %v203_v4   ;;  %s593_s11 = scalar_lea.vmem (!%p162_p10), %s804_s7, 1024  ;;  %s599_s21 = scalar_lea.vmem (!%p162_p10), %s598_s19, 2048 }
  0x15   : > { %p594_p12 = scmp.ne.s32.totalorder (!%p162_p10), %s804_s7, %s593_s11  ;;  %p600_p1 = scmp.lt.s32.totalorder (!%p162_p10), %s804_s7, %s598_s19 }
  0x16   : > { %s191_s23 = scalar_select %p190_p11, %s663_s15, 1 }
  0x17   : > { %s802_s15 = scalar_lea.hbm %s859_s3, %s525_s6  ;;  %p595_p13 = pnand %p594_p12, %p739_p4 }
  0x18   : > { %588 = vset.pattern.permute.xlu1 %v673_v2  ;;  %590 = vset.pattern.permute.xlu0 %v675_v6  ;;  %s524_s26 = sshll.u32 %s191_s23, 3  ;;  %p601_p2 = scmp.lt.s32.totalorder %s599_s21, %s593_s11 }
  0x19   : > { %261 = vperm.xlu1 %588, %v201_v5   ;;  %311 = vperm.xlu0 %590, %v201_v5   ;;  %s197_s29 = scalar_lea.vmem %s856_s0, %s524_s26  ;;  %p596_p0 = pneg %p595_p13 }
  0x1a   : > { %v208_v19 = vld [vmem:[%s197_s29] sm:$0x77]  ;;  %p602_p3 = por %p601_p2, %p600_p1 }
  0x1b   : > { %v233_v24 = vrot.slane %v208_v19, %v232_v16  ;;  %v237_v25 = vrot.slane %v208_v19, %v236_v17  ;;  %v275_v28 = vrot.slane %v208_v19, %v274_v20  ;;  %v279_v29 = vrot.slane %v208_v19, %v278_v21 }
  0x1c   : > { %v325_v30 = vrot.slane %v208_v19, %v324_v22  ;;  %v329_v31 = vrot.slane %v208_v19, %v328_v23  ;;  %p603_p5 = pnand %p602_p3, %p596_p0 }
  0x1d   : > { %265 = vperm.xlu1 %588, %v202_v0   ;;  %591 = vset.pattern.permute.xlu0 %v674_v3  ;;  %v243_v32 = vrot.slane %v233_v24, %v232_v16  ;;  %v247_v33 = vrot.slane %v237_v25, %v232_v16  ;;  %v285_v35 = vrot.slane %v275_v28, %v274_v20 }
  0x1e   : > { %211 = vperm.xlu0 %591, %v200_v1   ;;  %v289_v36 = vrot.slane %v279_v29, %v274_v20  ;;  %v335_v38 = vrot.slane %v325_v30, %v324_v22  ;;  %v339_v39 = vrot.slane %v329_v31, %v324_v22 }
  0x21   : > { %589 = vset.pattern.permute.xlu1 %v675_v6 }
  0x22   : > { %307 = vperm.xlu1 %589, %v200_v1   ;;  %216 = vperm.xlu0 %591, %v201_v5  }
  0x26   : > { %315 = vperm.xlu1 %589, %v202_v0   ;;  %358 = vperm.xlu0 %591, %v204_v7  }
  0x2a   : > { %319 = vperm.xlu1 %589, %v203_v4   ;;  %373 = vperm.xlu0 %591, %v207_v8  }
  0x2e   : > { %592 = vset.pattern.permute.xlu1 %v674_v3 }
  0x2f   : > { %363 = vperm.xlu1 %592, %v205_v9  }
  0x33   : > { %368 = vperm.xlu1 %592, %v206_v10  }
  0x8f   : > { %v222_v12 = vpop.permute.xlu1 %221  ;;  %v258_v13 = vpop.permute.xlu0 %257 }
  0x90   : > { %v290_v42 = vmul.f32 %v285_v35, %v258_v13  ;;  %v291_v43 = vmul.f32 %v289_v36, %v258_v13  ;;  %v252_v60 = vmul.f32 %v243_v32, %v222_v12  ;;  %v253_v61 = vmul.f32 %v247_v33, %v222_v12 }
  0x93   : > { %v227_v15 = vpop.permute.xlu1 %226  ;;  %v270_v18 = vpop.permute.xlu0 %269 }
  0x94   : > { %v254_v50 = vmul.f32 %v243_v32, %v227_v15  ;;  %v255_v51 = vmul.f32 %v247_v33, %v227_v15  ;;  %v296_v52 = vmul.f32 %v285_v35, %v270_v18  ;;  %v297_v53 = vmul.f32 %v289_v36, %v270_v18 }
  0x96   : > { %v304_v0 = vadd.f32 %v296_v52, %v254_v50  ;;  %v305_v1 = vadd.f32 %v297_v53, %v255_v51 }
  0x98   : > { %v262_v26 = vpop.permute.xlu1 %261  ;;  %v312_v27 = vpop.permute.xlu0 %311 }
  0x99   : > { %v292_v2 = vmul.f32 %v285_v35, %v262_v26  ;;  %v293_v3 = vmul.f32 %v289_v36, %v262_v26  ;;  %v342_v15 = vmul.f32 %v335_v38, %v312_v27  ;;  %v343_v16 = vmul.f32 %v339_v39, %v312_v27 }
  0x9c   : > { %v266_v34 = vpop.permute.xlu1 %265 }
  0x9d   : > { %v212_v37 = vpop.permute.xlu0 %211  ;;  %v294_v6 = vmul.f32 %v285_v35, %v266_v34  ;;  %v295_v7 = vmul.f32 %v289_v36, %v266_v34 }
  0x9e   : > { %v248_v40 = vmul.f32 %v243_v32, %v212_v37  ;;  %v249_v41 = vmul.f32 %v247_v33, %v212_v37 }
  0x9f   : > { %v302_v21 = vadd.f32 %v294_v6, %v252_v60  ;;  %v303_v22 = vadd.f32 %v295_v7, %v253_v61 }
  0xa0   : > { %v298_v46 = vadd.f32 %v290_v42, %v248_v40  ;;  %v299_v47 = vadd.f32 %v291_v43, %v249_v41 }
  0xa1   : > { %v308_v44 = vpop.permute.xlu1 %307  ;;  %v217_v45 = vpop.permute.xlu0 %216 }
  0xa2   : > { %v340_v48 = vmul.f32 %v335_v38, %v308_v44  ;;  %v341_v49 = vmul.f32 %v339_v39, %v308_v44  ;;  %v250_v56 = vmul.f32 %v243_v32, %v217_v45  ;;  %v251_v57 = vmul.f32 %v247_v33, %v217_v45 }
  0xa4   : > { %v348_v54 = vadd.f32 %v340_v48, %v298_v46  ;;  %v349_v55 = vadd.f32 %v341_v49, %v299_v47  ;;  %v300_v8 = vadd.f32 %v292_v2, %v250_v56  ;;  %v301_v9 = vadd.f32 %v293_v3, %v251_v57 }
  0xa5   : > { %v316_v58 = vpop.permute.xlu1 %315  ;;  %v359_v59 = vpop.permute.xlu0 %358 }
  0xa6   : > { %v376_v62 = vadd.f32 %v359_v59, %v348_v54  ;;  %v377_v63 = vadd.f32 %v359_v59, %v349_v55  ;;  %v344_v17 = vmul.f32 %v335_v38, %v316_v58  ;;  %v345_v18 = vmul.f32 %v339_v39, %v316_v58 }
  0xa7   : > { %v350_v24 = vadd.f32 %v342_v15, %v300_v8  ;;  %v351_v25 = vadd.f32 %v343_v16, %v301_v9 }
  0xa8   : > { %vm384_vm0 = vcmp.ge.f32.partialorder %v376_v62, 0.0  ;;  %vm385_vm1 = vcmp.ge.f32.partialorder %v377_v63, 0.0  ;;  %v392_v4 = vmul.f32 0.2, %v376_v62  ;;  %v393_v5 = vmul.f32 0.2, %v377_v63 }
  0xa9   : > { %v320_v10 = vpop.permute.xlu1 %319  ;;  %v374_v23 = vpop.permute.xlu0 %373  ;;  %v352_v31 = vadd.f32 %v344_v17, %v302_v21  ;;  %v353_v32 = vadd.f32 %v345_v18, %v303_v22 }
  0xaa   : > { %v400_v11 = vsel %vm384_vm0, %v376_v62, %v392_v4  ;;  %v401_v13 = vsel %vm385_vm1, %v377_v63, %v393_v5  ;;  %v346_v14 = vmul.f32 %v335_v38, %v320_v10  ;;  %v347_v12 = vmul.f32 %v339_v39, %v320_v10 }
  0xab   : > { %408 = vst [vmem:[%s789_s5] sm:$0xff] %v400_v11  ;;  %409 = vst [vmem:[%s789_s5 + $0x8] sm:$0xff] %v401_v13 }
  0xac   : > { %v354_v19 = vadd.f32 %v346_v14, %v304_v0  ;;  %v355_v20 = vadd.f32 %v347_v12, %v305_v1 }
  0xae   : > { %v382_v26 = vadd.f32 %v374_v23, %v354_v19  ;;  %v383_v28 = vadd.f32 %v374_v23, %v355_v20  ;;  %v364_v29 = vpop.permute.xlu1 %363 }
  0xaf   : > { %v378_v27 = vadd.f32 %v364_v29, %v350_v24  ;;  %v379_v30 = vadd.f32 %v364_v29, %v351_v25 }
  0xb0   : > { %vm390_vm2 = vcmp.ge.f32.partialorder %v382_v26, 0.0  ;;  %vm391_vm3 = vcmp.ge.f32.partialorder %v383_v28, 0.0  ;;  %v398_v33 = vmul.f32 0.2, %v382_v26  ;;  %v399_v34 = vmul.f32 0.2, %v383_v28 }
  0xb1   : > { %vm386_vm4 = vcmp.ge.f32.partialorder %v378_v27, 0.0  ;;  %vm387_vm5 = vcmp.ge.f32.partialorder %v379_v30, 0.0  ;;  %v394_v35 = vmul.f32 0.2, %v378_v27  ;;  %v395_v36 = vmul.f32 0.2, %v379_v30 }
  0xb2   : > { %v406_v37 = vsel %vm390_vm2, %v382_v26, %v398_v33  ;;  %v407_v38 = vsel %vm391_vm3, %v383_v28, %v399_v34  ;;  %v369_v39 = vpop.permute.xlu1 %368 }
  0xb3   : > { %414 = vst [vmem:[%s789_s5 + $0x30] sm:$0xff] %v406_v37  ;;  %415 = vst [vmem:[%s789_s5 + $0x38] sm:$0xff] %v407_v38  ;;  %v402_v40 = vsel %vm386_vm4, %v378_v27, %v394_v35  ;;  %v403_v41 = vsel %vm387_vm5, %v379_v30, %v395_v36  ;;  %v380_v42 = vadd.f32 %v369_v39, %v352_v31 }
  0xb4   : > { %v381_v43 = vadd.f32 %v369_v39, %v353_v32  ;;  %410 = vst [vmem:[%s789_s5 + $0x10] sm:$0xff] %v402_v40  ;;  %411 = vst [vmem:[%s789_s5 + $0x18] sm:$0xff] %v403_v41 }
  0xb5   : > { %vm388_vm6 = vcmp.ge.f32.partialorder %v380_v42, 0.0  ;;  %v396_v44 = vmul.f32 0.2, %v380_v42 }
  0xb6   : > { %vm389_vm7 = vcmp.ge.f32.partialorder %v381_v43, 0.0  ;;  %v397_v45 = vmul.f32 0.2, %v381_v43 }
  0xb7   : > { %v404_v46 = vsel %vm388_vm6, %v380_v42, %v396_v44 }
  0xb8   : > { %v405_v47 = vsel %vm389_vm7, %v381_v43, %v397_v45  ;;  %412 = vst [vmem:[%s789_s5 + $0x20] sm:$0xff] %v404_v46 }
  0xb9   : > { %413 = vst [vmem:[%s789_s5 + $0x28] sm:$0xff] %v405_v47 }
  0xba   : > { %606 = shalt.err (!%p603_p5)
}
  0xbb   : > { %s607_s23 = scalar_lea.hbm %s802_s15, 1024  ;;  %s611_s28 = scalar_lea.hbm %s859_s3, 2048 }
  0xbc   : > { %p608_p6 = scmp.ne.s32.totalorder %s802_s15, %s607_s23  ;;  %p612_p10 = scmp.lt.u32.totalorder %s802_s15, %s859_s3 }
  0xbd   : > { %p613_p11 = scmp.lt.u32.totalorder %s611_s28, %s607_s23  ;;  %p615_p13 = scmp.lt.u32.totalorder %s607_s23, %s802_s15 }
  0xbe   : > { %p609_p7 = pnand %p608_p6, %p739_p4 }
  0xbf   : > { %p614_p12 = por %p613_p11, %p612_p10 }
  0xc0   : > { %p610_p9 = pneg %p609_p7 }
  0xc1   : > { %p616_p0 = por %p615_p13, %p614_p12 }
  0xc3   : > { %p617_p1 = pnand %p616_p0, %p610_p9 }
  0xc5   : > { %620 = shalt.err (!%p617_p1)
}
  0xc6   : > { %s677_s4 = smov 256   ;;  %s678_s5 = smov 16  }
  0xc7   : > { %526 = dma.vmem_to_hbm [thread:$0]  (%p739_p4), %s804_s7, 1024, %s802_s15, %s810_s10, %s677_s4, %s677_s4, %s678_s5  }
  0xc8 PF: > { %p532_p2 = scmp.ge.s32.totalorder %s671_s17, 2  ;;  %s447_s6 = sand.u32 1, %s651_s12  }
  0xc9   : > { %s448_s8 = scalar_lea.sflag [#allocation3], %s447_s6 }
  0xca   : > { %p529_p3 = pnand %p532_p2, %p746_p8 }
  0xcc   : > { %646 = dma.done.wait (!%p529_p3), %s448_s8, 1024  }
  0xcd   : > { %648 = vsyncadd (!%p529_p3), %s448_s8, 4294966272  ;;  %s16_s17 = sadd.s32 1, %s671_s17   ;;  %s862_s12 = smov %s655_s13 }
  0xce   : > { %p13_p5 = scmp.ge.s32.totalorder %s16_s17, 4   ;;  %s863_s13 = smov %s659_s14 }
  0xcf   : > { %s864_s14 = smov %s752_s25  ;;  %s865_s15 = smov %s667_s16 }
  0xd0   : > { %s866_s16 = smov %s868_s20  ;;  %15 = sbr.rel (!%p13_p5) target bundleno = 4 (0x4), region = 67 }
  0xd7   :  { %453 = vsyncpa [#allocation3], 1 }
  0xd8   :  { %455 = vsyncpa [#allocation3 + $0x1], 1 }

</bundles_post_ra>
